<compile_context>
chip_gen: v5e
topology: v5e:2x2
jax: 0.10.0
libtpu: 0.0.40
codegen_flags: <defaults>
</compile_context>

<pallas_src>
import functools

import jax
import jax.numpy as jnp
from jax import lax
from jax.experimental import pallas as pl
from jax.experimental.pallas import tpu as pltpu


def _edge_padding_kernel(x_ref, o_ref, *, padding, C, H, W):
    """One grid step handles a block of Nb batch samples, lane-dense layout.

    x_ref: (Nb, C,   H*W )  VMEM
    o_ref: (Nb, C+1, Hp*Wp) VMEM
    """
    p = padding
    Hp = H + 2 * p
    Wp = W + 2 * p
    L = Hp * Wp
    Nb = x_ref.shape[0]
    dtype = o_ref.dtype

    # --- border mask for the extra channel, computed ONCE per grid step -----
    # Built from a lane iota plus per-row interval tests (no vector integer
    # div/mod).  Shape (1, 1, L); broadcast happens implicitly by storing the
    # same row per sample inside the loop (no materialized (Nb, L) value).
    lane = lax.broadcasted_iota(jnp.int32, (1, 1, L), 2)
    start0 = p * Wp + p
    interior = (lane >= start0) & (lane < start0 + W)
    for h in range(1, H):
        s = (h + p) * Wp + p
        interior = interior | ((lane >= s) & (lane < s + W))
    mask_row = jnp.where(interior, 0.0, 1.0).astype(dtype)        # (1, 1, L)

    zeros_img = jnp.zeros((1, C, L), dtype=dtype)                  # splat

    def write_sample(n, carry):
        # Image channels [0, C): zero-fill the whole flattened channel
        # (dense 128-lane stores), then overwrite the interior rows with x.
        o_ref[pl.ds(n, 1), 0:C, :] = zeros_img
        for h in range(H):
            dst = (h + p) * Wp + p          # static lane offset
            src = h * W                     # static lane offset
            o_ref[pl.ds(n, 1), 0:C, dst:dst + W] = \
                x_ref[pl.ds(n, 1), :, src:src + W]
        # Edge-constant channel C: written exactly once.
        o_ref[pl.ds(n, 1), C:C + 1, :] = mask_row
        return carry

    lax.fori_loop(0, Nb, write_sample, 0, unroll=(Nb <= 8))


def _round_up(a, m):
    return -(-a // m) * m


def _sublane_tile(itemsize):
    """Sublane tile of the VMEM (sublane, 128-lane) tiling for this dtype."""
    return max(8, 32 // max(1, itemsize))   # f32->8, bf16->16, int8/fp8->32


def _chip_info():
    """(physical VMEM bytes, TensorCores behind one device). Defensive."""
    vmem = 64 * 1024 * 1024          # conservative default (v7x-sized)
    cores = 1
    try:
        info = pltpu.get_tpu_info()
        vmem = int(getattr(info, "vmem_capacity_bytes", vmem)) or vmem
        cores = int(getattr(info, "num_cores", cores)) or cores
    except Exception:
        pass
    if cores <= 1:
        try:
            kind = jax.devices()[0].device_kind.lower()
            # v4 / v5p (megacore) and v7x expose 2 TensorCores per device.
            if any(tag in kind for tag in ("v7", "v4", "v5p")):
                cores = 2
        except Exception:
            pass
    return vmem, max(1, min(2, cores))


def _choose_block_batch(N, C, H, W, padding, itemsize, budget_bytes, num_cores):
    """Largest divisor of N whose double-buffered flattened in+out blocks fit
    the budget; on multi-TC chips keep >=2 grid steps per core and a grid
    length that is a multiple of the core count."""
    p = padding
    L = (H + 2 * p) * (W + 2 * p)
    sub = _sublane_tile(itemsize)
    in_bytes = _round_up(C, sub) * _round_up(H * W, 128) * itemsize
    out_bytes = _round_up(C + 1, sub) * _round_up(L, 128) * itemsize
    per_sample = 2 * (in_bytes + out_bytes)        # x2 for double buffering
    cap = max(1, int(budget_bytes) // per_sample)
    cap = min(cap, N)
    if num_cores >= 2 and N >= 4 * num_cores:
        cap = min(cap, max(1, N // (2 * num_cores)))
    divisors = [d for d in range(1, cap + 1) if N % d == 0]
    if num_cores >= 2:
        even = [d for d in divisors if (N // d) % num_cores == 0]
        if even:
            return even[-1]
    return divisors[-1]


def edge_padding(x, padding=1):
    """Pallas TPU implementation of EdgePadding.forward (NCHW)."""
    # padding == 0 is degenerate in the original module (numpy [-0:] slicing
    # marks the whole mask as border); require padding >= 1 like real usage.
    assert padding >= 1, "EdgePadding requires padding >= 1"
    N, C, H, W = x.shape
    p = padding
    Hp, Wp = H + 2 * p, W + 2 * p
    L = Hp * Wp
    itemsize = jnp.dtype(x.dtype).itemsize

    vmem_phys, num_cores = _chip_info()
    # Block budget: quarter of physical VMEM (32 MiB on 128 MiB v5e/v6e,
    # 16 MiB on 64 MiB v7x); scoped VMEM limit gets 2x headroom over that.
    budget = vmem_phys // 4
    vmem_limit = int(min(max(vmem_phys // 2, 32 * 1024 * 1024),
                         96 * 1024 * 1024))

    Nb = _choose_block_batch(N, C, H, W, p, itemsize, budget, num_cores)
    grid = (N // Nb,)

    kernel = functools.partial(_edge_padding_kernel, padding=p, C=C, H=H, W=W)

    bytes_accessed = itemsize * (N * C * H * W + N * (C + 1) * L)
    cost = pl.CostEstimate(flops=N * (C + 1) * L,
                           transcendentals=0,
                           bytes_accessed=bytes_accessed)

    # Lane-dense views: free contiguous reshapes in the wrapper.
    x_flat = x.reshape(N, C, H * W)

    out_flat = pl.pallas_call(
        kernel,
        out_shape=jax.ShapeDtypeStruct((N, C + 1, L), x.dtype),
        grid_spec=pltpu.PrefetchScalarGridSpec(
            num_scalar_prefetch=0,
            grid=grid,
            in_specs=[pl.BlockSpec((Nb, C, H * W), lambda n: (n, 0, 0))],
            out_specs=pl.BlockSpec((Nb, C + 1, L), lambda n: (n, 0, 0)),
        ),
        compiler_params=pltpu.CompilerParams(
            dimension_semantics=("parallel",),
            vmem_limit_bytes=vmem_limit),
        cost_estimate=cost,
    )(x_flat)

    return out_flat.reshape(N, C + 1, Hp, Wp)


def _reference(x, padding=1):
    """Plain-JAX reference mirroring the PyTorch module semantics (p >= 1)."""
    N, C, H, W = x.shape
    p = padding
    x_tilde = jnp.pad(x, ((0, 0), (0, 0), (p, p), (p, p)))
    mask = jnp.zeros((1, 1, H + 2 * p, W + 2 * p), dtype=x.dtype)
    mask = mask.at[:, 0, :p, :].set(1.0)
    mask = mask.at[:, 0, -p:, :].set(1.0)
    mask = mask.at[:, 0, :, :p].set(1.0)
    mask = mask.at[:, 0, :, -p:].set(1.0)
    mask = jnp.tile(mask, (N, 1, 1, 1))
    return jnp.concatenate([x_tilde, mask], axis=1)


if __name__ == "__main__":
    key = jax.random.PRNGKey(0)
    N, C, H, W = 2, 4, 16, 16
    x = jax.random.normal(key, (N, C, H, W), dtype=jnp.float32)

    out = edge_padding(x, padding=1)
    out = jax.block_until_ready(out)

    ref = _reference(x, padding=1)
    assert out.shape == (N, C + 1, H + 2, W + 2), out.shape
    assert jnp.array_equal(out, ref), "mismatch vs reference"

    print("KERNEL_OK")
</pallas_src>

<mosaic_0001>
module attributes {stable_mosaic.version = 11 : i64} {
  func.func @_edge_padding_kernel(%arg0: i32, %arg1: memref<2x4x256xf32, #tpu.memory_space<vmem>>, %arg2: memref<2x5x324xf32, #tpu.memory_space<vmem>>) attributes {dimension_semantics = [#tpu.dimension_semantics<parallel>], iteration_bounds = array<i64: 1>, scalar_prefetch = 0 : i64, scratch_operands = 0 : i64, tpu.core_type = #tpu.core_type<tc>, window_params = [{transform_indices = @transform_0, window_bounds = array<i64: 2, 4, 256>}, {transform_indices = @transform_1, window_bounds = array<i64: 2, 5, 324>}]} {
    %0 = tpu.iota {dimensions = array<i32: 2>} : vector<1x1x324xi32>
    %c19_i32 = arith.constant 19 : i32
    %1 = vector.broadcast %c19_i32 : i32 to vector<1x1x324xi32>
    %2 = arith.cmpi sge, %0, %1 : vector<1x1x324xi32>
    %c35_i32 = arith.constant 35 : i32
    %3 = vector.broadcast %c35_i32 : i32 to vector<1x1x324xi32>
    %4 = arith.cmpi slt, %0, %3 : vector<1x1x324xi32>
    %5 = arith.andi %2, %4 : vector<1x1x324xi1>
    %c37_i32 = arith.constant 37 : i32
    %6 = vector.broadcast %c37_i32 : i32 to vector<1x1x324xi32>
    %7 = arith.cmpi sge, %0, %6 : vector<1x1x324xi32>
    %c53_i32 = arith.constant 53 : i32
    %8 = vector.broadcast %c53_i32 : i32 to vector<1x1x324xi32>
    %9 = arith.cmpi slt, %0, %8 : vector<1x1x324xi32>
    %10 = arith.andi %7, %9 : vector<1x1x324xi1>
    %11 = arith.ori %5, %10 : vector<1x1x324xi1>
    %c55_i32 = arith.constant 55 : i32
    %12 = vector.broadcast %c55_i32 : i32 to vector<1x1x324xi32>
    %13 = arith.cmpi sge, %0, %12 : vector<1x1x324xi32>
    %c71_i32 = arith.constant 71 : i32
    %14 = vector.broadcast %c71_i32 : i32 to vector<1x1x324xi32>
    %15 = arith.cmpi slt, %0, %14 : vector<1x1x324xi32>
    %16 = arith.andi %13, %15 : vector<1x1x324xi1>
    %17 = arith.ori %11, %16 : vector<1x1x324xi1>
    %c73_i32 = arith.constant 73 : i32
    %18 = vector.broadcast %c73_i32 : i32 to vector<1x1x324xi32>
    %19 = arith.cmpi sge, %0, %18 : vector<1x1x324xi32>
    %c89_i32 = arith.constant 89 : i32
    %20 = vector.broadcast %c89_i32 : i32 to vector<1x1x324xi32>
    %21 = arith.cmpi slt, %0, %20 : vector<1x1x324xi32>
    %22 = arith.andi %19, %21 : vector<1x1x324xi1>
    %23 = arith.ori %17, %22 : vector<1x1x324xi1>
    %c91_i32 = arith.constant 91 : i32
    %24 = vector.broadcast %c91_i32 : i32 to vector<1x1x324xi32>
    %25 = arith.cmpi sge, %0, %24 : vector<1x1x324xi32>
    %c107_i32 = arith.constant 107 : i32
    %26 = vector.broadcast %c107_i32 : i32 to vector<1x1x324xi32>
    %27 = arith.cmpi slt, %0, %26 : vector<1x1x324xi32>
    %28 = arith.andi %25, %27 : vector<1x1x324xi1>
    %29 = arith.ori %23, %28 : vector<1x1x324xi1>
    %c109_i32 = arith.constant 109 : i32
    %30 = vector.broadcast %c109_i32 : i32 to vector<1x1x324xi32>
    %31 = arith.cmpi sge, %0, %30 : vector<1x1x324xi32>
    %c125_i32 = arith.constant 125 : i32
    %32 = vector.broadcast %c125_i32 : i32 to vector<1x1x324xi32>
    %33 = arith.cmpi slt, %0, %32 : vector<1x1x324xi32>
    %34 = arith.andi %31, %33 : vector<1x1x324xi1>
    %35 = arith.ori %29, %34 : vector<1x1x324xi1>
    %c127_i32 = arith.constant 127 : i32
    %36 = vector.broadcast %c127_i32 : i32 to vector<1x1x324xi32>
    %37 = arith.cmpi sge, %0, %36 : vector<1x1x324xi32>
    %c143_i32 = arith.constant 143 : i32
    %38 = vector.broadcast %c143_i32 : i32 to vector<1x1x324xi32>
    %39 = arith.cmpi slt, %0, %38 : vector<1x1x324xi32>
    %40 = arith.andi %37, %39 : vector<1x1x324xi1>
    %41 = arith.ori %35, %40 : vector<1x1x324xi1>
    %c145_i32 = arith.constant 145 : i32
    %42 = vector.broadcast %c145_i32 : i32 to vector<1x1x324xi32>
    %43 = arith.cmpi sge, %0, %42 : vector<1x1x324xi32>
    %c161_i32 = arith.constant 161 : i32
    %44 = vector.broadcast %c161_i32 : i32 to vector<1x1x324xi32>
    %45 = arith.cmpi slt, %0, %44 : vector<1x1x324xi32>
    %46 = arith.andi %43, %45 : vector<1x1x324xi1>
    %47 = arith.ori %41, %46 : vector<1x1x324xi1>
    %c163_i32 = arith.constant 163 : i32
    %48 = vector.broadcast %c163_i32 : i32 to vector<1x1x324xi32>
    %49 = arith.cmpi sge, %0, %48 : vector<1x1x324xi32>
    %c179_i32 = arith.constant 179 : i32
    %50 = vector.broadcast %c179_i32 : i32 to vector<1x1x324xi32>
    %51 = arith.cmpi slt, %0, %50 : vector<1x1x324xi32>
    %52 = arith.andi %49, %51 : vector<1x1x324xi1>
    %53 = arith.ori %47, %52 : vector<1x1x324xi1>
    %c181_i32 = arith.constant 181 : i32
    %54 = vector.broadcast %c181_i32 : i32 to vector<1x1x324xi32>
    %55 = arith.cmpi sge, %0, %54 : vector<1x1x324xi32>
    %c197_i32 = arith.constant 197 : i32
    %56 = vector.broadcast %c197_i32 : i32 to vector<1x1x324xi32>
    %57 = arith.cmpi slt, %0, %56 : vector<1x1x324xi32>
    %58 = arith.andi %55, %57 : vector<1x1x324xi1>
    %59 = arith.ori %53, %58 : vector<1x1x324xi1>
    %c199_i32 = arith.constant 199 : i32
    %60 = vector.broadcast %c199_i32 : i32 to vector<1x1x324xi32>
    %61 = arith.cmpi sge, %0, %60 : vector<1x1x324xi32>
    %c215_i32 = arith.constant 215 : i32
    %62 = vector.broadcast %c215_i32 : i32 to vector<1x1x324xi32>
    %63 = arith.cmpi slt, %0, %62 : vector<1x1x324xi32>
    %64 = arith.andi %61, %63 : vector<1x1x324xi1>
    %65 = arith.ori %59, %64 : vector<1x1x324xi1>
    %c217_i32 = arith.constant 217 : i32
    %66 = vector.broadcast %c217_i32 : i32 to vector<1x1x324xi32>
    %67 = arith.cmpi sge, %0, %66 : vector<1x1x324xi32>
    %c233_i32 = arith.constant 233 : i32
    %68 = vector.broadcast %c233_i32 : i32 to vector<1x1x324xi32>
    %69 = arith.cmpi slt, %0, %68 : vector<1x1x324xi32>
    %70 = arith.andi %67, %69 : vector<1x1x324xi1>
    %71 = arith.ori %65, %70 : vector<1x1x324xi1>
    %c235_i32 = arith.constant 235 : i32
    %72 = vector.broadcast %c235_i32 : i32 to vector<1x1x324xi32>
    %73 = arith.cmpi sge, %0, %72 : vector<1x1x324xi32>
    %c251_i32 = arith.constant 251 : i32
    %74 = vector.broadcast %c251_i32 : i32 to vector<1x1x324xi32>
    %75 = arith.cmpi slt, %0, %74 : vector<1x1x324xi32>
    %76 = arith.andi %73, %75 : vector<1x1x324xi1>
    %77 = arith.ori %71, %76 : vector<1x1x324xi1>
    %c253_i32 = arith.constant 253 : i32
    %78 = vector.broadcast %c253_i32 : i32 to vector<1x1x324xi32>
    %79 = arith.cmpi sge, %0, %78 : vector<1x1x324xi32>
    %c269_i32 = arith.constant 269 : i32
    %80 = vector.broadcast %c269_i32 : i32 to vector<1x1x324xi32>
    %81 = arith.cmpi slt, %0, %80 : vector<1x1x324xi32>
    %82 = arith.andi %79, %81 : vector<1x1x324xi1>
    %83 = arith.ori %77, %82 : vector<1x1x324xi1>
    %c271_i32 = arith.constant 271 : i32
    %84 = vector.broadcast %c271_i32 : i32 to vector<1x1x324xi32>
    %85 = arith.cmpi sge, %0, %84 : vector<1x1x324xi32>
    %c287_i32 = arith.constant 287 : i32
    %86 = vector.broadcast %c287_i32 : i32 to vector<1x1x324xi32>
    %87 = arith.cmpi slt, %0, %86 : vector<1x1x324xi32>
    %88 = arith.andi %85, %87 : vector<1x1x324xi1>
    %89 = arith.ori %83, %88 : vector<1x1x324xi1>
    %c289_i32 = arith.constant 289 : i32
    %90 = vector.broadcast %c289_i32 : i32 to vector<1x1x324xi32>
    %91 = arith.cmpi sge, %0, %90 : vector<1x1x324xi32>
    %c305_i32 = arith.constant 305 : i32
    %92 = vector.broadcast %c305_i32 : i32 to vector<1x1x324xi32>
    %93 = arith.cmpi slt, %0, %92 : vector<1x1x324xi32>
    %94 = arith.andi %91, %93 : vector<1x1x324xi1>
    %95 = arith.ori %89, %94 : vector<1x1x324xi1>
    %cst = arith.constant 0.000000e+00 : f32
    %cst_0 = arith.constant 1.000000e+00 : f32
    %96 = vector.broadcast %cst : f32 to vector<1x1x324xf32>
    %97 = vector.broadcast %cst_0 : f32 to vector<1x1x324xf32>
    %98 = arith.select %95, %96, %97 : vector<1x1x324xi1>, vector<1x1x324xf32>
    %cst_1 = arith.constant 0.000000e+00 : f32
    %99 = vector.broadcast %cst_1 : f32 to vector<1x4x324xf32>
    %c0_i32 = arith.constant 0 : i32
    %100 = arith.index_cast %c0_i32 : i32 to index
    %c0 = arith.constant 0 : index
    %c0_2 = arith.constant 0 : index
    %101 = vector.load %arg2[%100, %c0, %c0_2] : memref<2x5x324xf32, #tpu.memory_space<vmem>>, vector<1x4x324xf32>
    tpu.vector_store %arg2[%100, %c0, %c0_2], %99 {strides = array<i32>} : memref<2x5x324xf32, #tpu.memory_space<vmem>>, vector<1x4x324xf32>,
    %102 = arith.index_cast %c0_i32 : i32 to index
    %c0_3 = arith.constant 0 : index
    %c0_4 = arith.constant 0 : index
    %103 = vector.load %arg1[%102, %c0_3, %c0_4] : memref<2x4x256xf32, #tpu.memory_space<vmem>>, vector<1x4x16xf32>
    %104 = arith.index_cast %c0_i32 : i32 to index
    %c0_5 = arith.constant 0 : index
    %c19 = arith.constant 19 : index
    %105 = vector.load %arg2[%104, %c0_5, %c19] : memref<2x5x324xf32, #tpu.memory_space<vmem>>, vector<1x4x16xf32>
    tpu.vector_store %arg2[%104, %c0_5, %c19], %103 {strides = array<i32>} : memref<2x5x324xf32, #tpu.memory_space<vmem>>, vector<1x4x16xf32>,
    %106 = arith.index_cast %c0_i32 : i32 to index
    %c0_6 = arith.constant 0 : index
    %c16 = arith.constant 16 : index
    %107 = vector.load %arg1[%106, %c0_6, %c16] : memref<2x4x256xf32, #tpu.memory_space<vmem>>, vector<1x4x16xf32>
    %108 = arith.index_cast %c0_i32 : i32 to index
    %c0_7 = arith.constant 0 : index
    %c37 = arith.constant 37 : index
    %109 = vector.load %arg2[%108, %c0_7, %c37] : memref<2x5x324xf32, #tpu.memory_space<vmem>>, vector<1x4x16xf32>
    tpu.vector_store %arg2[%108, %c0_7, %c37], %107 {strides = array<i32>} : memref<2x5x324xf32, #tpu.memory_space<vmem>>, vector<1x4x16xf32>,
    %110 = arith.index_cast %c0_i32 : i32 to index
    %c0_8 = arith.constant 0 : index
    %c32 = arith.constant 32 : index
    %111 = vector.load %arg1[%110, %c0_8, %c32] : memref<2x4x256xf32, #tpu.memory_space<vmem>>, vector<1x4x16xf32>
    %112 = arith.index_cast %c0_i32 : i32 to index
    %c0_9 = arith.constant 0 : index
    %c55 = arith.constant 55 : index
    %113 = vector.load %arg2[%112, %c0_9, %c55] : memref<2x5x324xf32, #tpu.memory_space<vmem>>, vector<1x4x16xf32>
    tpu.vector_store %arg2[%112, %c0_9, %c55], %111 {strides = array<i32>} : memref<2x5x324xf32, #tpu.memory_space<vmem>>, vector<1x4x16xf32>,
    %114 = arith.index_cast %c0_i32 : i32 to index
    %c0_10 = arith.constant 0 : index
    %c48 = arith.constant 48 : index
    %115 = vector.load %arg1[%114, %c0_10, %c48] : memref<2x4x256xf32, #tpu.memory_space<vmem>>, vector<1x4x16xf32>
    %116 = arith.index_cast %c0_i32 : i32 to index
    %c0_11 = arith.constant 0 : index
    %c73 = arith.constant 73 : index
    %117 = vector.load %arg2[%116, %c0_11, %c73] : memref<2x5x324xf32, #tpu.memory_space<vmem>>, vector<1x4x16xf32>
    tpu.vector_store %arg2[%116, %c0_11, %c73], %115 {strides = array<i32>} : memref<2x5x324xf32, #tpu.memory_space<vmem>>, vector<1x4x16xf32>,
    %118 = arith.index_cast %c0_i32 : i32 to index
    %c0_12 = arith.constant 0 : index
    %c64 = arith.constant 64 : index
    %119 = vector.load %arg1[%118, %c0_12, %c64] : memref<2x4x256xf32, #tpu.memory_space<vmem>>, vector<1x4x16xf32>
    %120 = arith.index_cast %c0_i32 : i32 to index
    %c0_13 = arith.constant 0 : index
    %c91 = arith.constant 91 : index
    %121 = vector.load %arg2[%120, %c0_13, %c91] : memref<2x5x324xf32, #tpu.memory_space<vmem>>, vector<1x4x16xf32>
    tpu.vector_store %arg2[%120, %c0_13, %c91], %119 {strides = array<i32>} : memref<2x5x324xf32, #tpu.memory_space<vmem>>, vector<1x4x16xf32>,
    %122 = arith.index_cast %c0_i32 : i32 to index
    %c0_14 = arith.constant 0 : index
    %c80 = arith.constant 80 : index
    %123 = vector.load %arg1[%122, %c0_14, %c80] : memref<2x4x256xf32, #tpu.memory_space<vmem>>, vector<1x4x16xf32>
    %124 = arith.index_cast %c0_i32 : i32 to index
    %c0_15 = arith.constant 0 : index
    %c109 = arith.constant 109 : index
    %125 = vector.load %arg2[%124, %c0_15, %c109] : memref<2x5x324xf32, #tpu.memory_space<vmem>>, vector<1x4x16xf32>
    tpu.vector_store %arg2[%124, %c0_15, %c109], %123 {strides = array<i32>} : memref<2x5x324xf32, #tpu.memory_space<vmem>>, vector<1x4x16xf32>,
    %126 = arith.index_cast %c0_i32 : i32 to index
    %c0_16 = arith.constant 0 : index
    %c96 = arith.constant 96 : index
    %127 = vector.load %arg1[%126, %c0_16, %c96] : memref<2x4x256xf32, #tpu.memory_space<vmem>>, vector<1x4x16xf32>
    %128 = arith.index_cast %c0_i32 : i32 to index
    %c0_17 = arith.constant 0 : index
    %c127 = arith.constant 127 : index
    %129 = vector.load %arg2[%128, %c0_17, %c127] : memref<2x5x324xf32, #tpu.memory_space<vmem>>, vector<1x4x16xf32>
    tpu.vector_store %arg2[%128, %c0_17, %c127], %127 {strides = array<i32>} : memref<2x5x324xf32, #tpu.memory_space<vmem>>, vector<1x4x16xf32>,
    %130 = arith.index_cast %c0_i32 : i32 to index
    %c0_18 = arith.constant 0 : index
    %c112 = arith.constant 112 : index
    %131 = vector.load %arg1[%130, %c0_18, %c112] : memref<2x4x256xf32, #tpu.memory_space<vmem>>, vector<1x4x16xf32>
    %132 = arith.index_cast %c0_i32 : i32 to index
    %c0_19 = arith.constant 0 : index
    %c145 = arith.constant 145 : index
    %133 = vector.load %arg2[%132, %c0_19, %c145] : memref<2x5x324xf32, #tpu.memory_space<vmem>>, vector<1x4x16xf32>
    tpu.vector_store %arg2[%132, %c0_19, %c145], %131 {strides = array<i32>} : memref<2x5x324xf32, #tpu.memory_space<vmem>>, vector<1x4x16xf32>,
    %134 = arith.index_cast %c0_i32 : i32 to index
    %c0_20 = arith.constant 0 : index
    %c128 = arith.constant 128 : index
    %135 = vector.load %arg1[%134, %c0_20, %c128] : memref<2x4x256xf32, #tpu.memory_space<vmem>>, vector<1x4x16xf32>
    %136 = arith.index_cast %c0_i32 : i32 to index
    %c0_21 = arith.constant 0 : index
    %c163 = arith.constant 163 : index
    %137 = vector.load %arg2[%136, %c0_21, %c163] : memref<2x5x324xf32, #tpu.memory_space<vmem>>, vector<1x4x16xf32>
    tpu.vector_store %arg2[%136, %c0_21, %c163], %135 {strides = array<i32>} : memref<2x5x324xf32, #tpu.memory_space<vmem>>, vector<1x4x16xf32>,
    %138 = arith.index_cast %c0_i32 : i32 to index
    %c0_22 = arith.constant 0 : index
    %c144 = arith.constant 144 : index
    %139 = vector.load %arg1[%138, %c0_22, %c144] : memref<2x4x256xf32, #tpu.memory_space<vmem>>, vector<1x4x16xf32>
    %140 = arith.index_cast %c0_i32 : i32 to index
    %c0_23 = arith.constant 0 : index
    %c181 = arith.constant 181 : index
    %141 = vector.load %arg2[%140, %c0_23, %c181] : memref<2x5x324xf32, #tpu.memory_space<vmem>>, vector<1x4x16xf32>
    tpu.vector_store %arg2[%140, %c0_23, %c181], %139 {strides = array<i32>} : memref<2x5x324xf32, #tpu.memory_space<vmem>>, vector<1x4x16xf32>,
    %142 = arith.index_cast %c0_i32 : i32 to index
    %c0_24 = arith.constant 0 : index
    %c160 = arith.constant 160 : index
    %143 = vector.load %arg1[%142, %c0_24, %c160] : memref<2x4x256xf32, #tpu.memory_space<vmem>>, vector<1x4x16xf32>
    %144 = arith.index_cast %c0_i32 : i32 to index
    %c0_25 = arith.constant 0 : index
    %c199 = arith.constant 199 : index
    %145 = vector.load %arg2[%144, %c0_25, %c199] : memref<2x5x324xf32, #tpu.memory_space<vmem>>, vector<1x4x16xf32>
    tpu.vector_store %arg2[%144, %c0_25, %c199], %143 {strides = array<i32>} : memref<2x5x324xf32, #tpu.memory_space<vmem>>, vector<1x4x16xf32>,
    %146 = arith.index_cast %c0_i32 : i32 to index
    %c0_26 = arith.constant 0 : index
    %c176 = arith.constant 176 : index
    %147 = vector.load %arg1[%146, %c0_26, %c176] : memref<2x4x256xf32, #tpu.memory_space<vmem>>, vector<1x4x16xf32>
    %148 = arith.index_cast %c0_i32 : i32 to index
    %c0_27 = arith.constant 0 : index
    %c217 = arith.constant 217 : index
    %149 = vector.load %arg2[%148, %c0_27, %c217] : memref<2x5x324xf32, #tpu.memory_space<vmem>>, vector<1x4x16xf32>
    tpu.vector_store %arg2[%148, %c0_27, %c217], %147 {strides = array<i32>} : memref<2x5x324xf32, #tpu.memory_space<vmem>>, vector<1x4x16xf32>,
    %150 = arith.index_cast %c0_i32 : i32 to index
    %c0_28 = arith.constant 0 : index
    %c192 = arith.constant 192 : index
    %151 = vector.load %arg1[%150, %c0_28, %c192] : memref<2x4x256xf32, #tpu.memory_space<vmem>>, vector<1x4x16xf32>
    %152 = arith.index_cast %c0_i32 : i32 to index
    %c0_29 = arith.constant 0 : index
    %c235 = arith.constant 235 : index
    %153 = vector.load %arg2[%152, %c0_29, %c235] : memref<2x5x324xf32, #tpu.memory_space<vmem>>, vector<1x4x16xf32>
    tpu.vector_store %arg2[%152, %c0_29, %c235], %151 {strides = array<i32>} : memref<2x5x324xf32, #tpu.memory_space<vmem>>, vector<1x4x16xf32>,
    %154 = arith.index_cast %c0_i32 : i32 to index
    %c0_30 = arith.constant 0 : index
    %c208 = arith.constant 208 : index
    %155 = vector.load %arg1[%154, %c0_30, %c208] : memref<2x4x256xf32, #tpu.memory_space<vmem>>, vector<1x4x16xf32>
    %156 = arith.index_cast %c0_i32 : i32 to index
    %c0_31 = arith.constant 0 : index
    %c253 = arith.constant 253 : index
    %157 = vector.load %arg2[%156, %c0_31, %c253] : memref<2x5x324xf32, #tpu.memory_space<vmem>>, vector<1x4x16xf32>
    tpu.vector_store %arg2[%156, %c0_31, %c253], %155 {strides = array<i32>} : memref<2x5x324xf32, #tpu.memory_space<vmem>>, vector<1x4x16xf32>,
    %158 = arith.index_cast %c0_i32 : i32 to index
    %c0_32 = arith.constant 0 : index
    %c224 = arith.constant 224 : index
    %159 = vector.load %arg1[%158, %c0_32, %c224] : memref<2x4x256xf32, #tpu.memory_space<vmem>>, vector<1x4x16xf32>
    %160 = arith.index_cast %c0_i32 : i32 to index
    %c0_33 = arith.constant 0 : index
    %c271 = arith.constant 271 : index
    %161 = vector.load %arg2[%160, %c0_33, %c271] : memref<2x5x324xf32, #tpu.memory_space<vmem>>, vector<1x4x16xf32>
    tpu.vector_store %arg2[%160, %c0_33, %c271], %159 {strides = array<i32>} : memref<2x5x324xf32, #tpu.memory_space<vmem>>, vector<1x4x16xf32>,
    %162 = arith.index_cast %c0_i32 : i32 to index
    %c0_34 = arith.constant 0 : index
    %c240 = arith.constant 240 : index
    %163 = vector.load %arg1[%162, %c0_34, %c240] : memref<2x4x256xf32, #tpu.memory_space<vmem>>, vector<1x4x16xf32>
    %164 = arith.index_cast %c0_i32 : i32 to index
    %c0_35 = arith.constant 0 : index
    %c289 = arith.constant 289 : index
    %165 = vector.load %arg2[%164, %c0_35, %c289] : memref<2x5x324xf32, #tpu.memory_space<vmem>>, vector<1x4x16xf32>
    tpu.vector_store %arg2[%164, %c0_35, %c289], %163 {strides = array<i32>} : memref<2x5x324xf32, #tpu.memory_space<vmem>>, vector<1x4x16xf32>,
    %166 = arith.index_cast %c0_i32 : i32 to index
    %c4 = arith.constant 4 : index
    %c0_36 = arith.constant 0 : index
    %167 = vector.load %arg2[%166, %c4, %c0_36] : memref<2x5x324xf32, #tpu.memory_space<vmem>>, vector<1x1x324xf32>
    tpu.vector_store %arg2[%166, %c4, %c0_36], %98 {strides = array<i32>} : memref<2x5x324xf32, #tpu.memory_space<vmem>>, vector<1x1x324xf32>,
    %c1_i32 = arith.constant 1 : i32
    %168 = arith.index_cast %c1_i32 : i32 to index
    %c0_37 = arith.constant 0 : index
    %c0_38 = arith.constant 0 : index
    %169 = vector.load %arg2[%168, %c0_37, %c0_38] : memref<2x5x324xf32, #tpu.memory_space<vmem>>, vector<1x4x324xf32>
    tpu.vector_store %arg2[%168, %c0_37, %c0_38], %99 {strides = array<i32>} : memref<2x5x324xf32, #tpu.memory_space<vmem>>, vector<1x4x324xf32>,
    %170 = arith.index_cast %c1_i32 : i32 to index
    %c0_39 = arith.constant 0 : index
    %c0_40 = arith.constant 0 : index
    %171 = vector.load %arg1[%170, %c0_39, %c0_40] : memref<2x4x256xf32, #tpu.memory_space<vmem>>, vector<1x4x16xf32>
    %172 = arith.index_cast %c1_i32 : i32 to index
    %c0_41 = arith.constant 0 : index
    %c19_42 = arith.constant 19 : index
    %173 = vector.load %arg2[%172, %c0_41, %c19_42] : memref<2x5x324xf32, #tpu.memory_space<vmem>>, vector<1x4x16xf32>
    tpu.vector_store %arg2[%172, %c0_41, %c19_42], %171 {strides = array<i32>} : memref<2x5x324xf32, #tpu.memory_space<vmem>>, vector<1x4x16xf32>,
    %174 = arith.index_cast %c1_i32 : i32 to index
    %c0_43 = arith.constant 0 : index
    %c16_44 = arith.constant 16 : index
    %175 = vector.load %arg1[%174, %c0_43, %c16_44] : memref<2x4x256xf32, #tpu.memory_space<vmem>>, vector<1x4x16xf32>
    %176 = arith.index_cast %c1_i32 : i32 to index
    %c0_45 = arith.constant 0 : index
    %c37_46 = arith.constant 37 : index
    %177 = vector.load %arg2[%176, %c0_45, %c37_46] : memref<2x5x324xf32, #tpu.memory_space<vmem>>, vector<1x4x16xf32>
    tpu.vector_store %arg2[%176, %c0_45, %c37_46], %175 {strides = array<i32>} : memref<2x5x324xf32, #tpu.memory_space<vmem>>, vector<1x4x16xf32>,
    %178 = arith.index_cast %c1_i32 : i32 to index
    %c0_47 = arith.constant 0 : index
    %c32_48 = arith.constant 32 : index
    %179 = vector.load %arg1[%178, %c0_47, %c32_48] : memref<2x4x256xf32, #tpu.memory_space<vmem>>, vector<1x4x16xf32>
    %180 = arith.index_cast %c1_i32 : i32 to index
    %c0_49 = arith.constant 0 : index
    %c55_50 = arith.constant 55 : index
    %181 = vector.load %arg2[%180, %c0_49, %c55_50] : memref<2x5x324xf32, #tpu.memory_space<vmem>>, vector<1x4x16xf32>
    tpu.vector_store %arg2[%180, %c0_49, %c55_50], %179 {strides = array<i32>} : memref<2x5x324xf32, #tpu.memory_space<vmem>>, vector<1x4x16xf32>,
    %182 = arith.index_cast %c1_i32 : i32 to index
    %c0_51 = arith.constant 0 : index
    %c48_52 = arith.constant 48 : index
    %183 = vector.load %arg1[%182, %c0_51, %c48_52] : memref<2x4x256xf32, #tpu.memory_space<vmem>>, vector<1x4x16xf32>
    %184 = arith.index_cast %c1_i32 : i32 to index
    %c0_53 = arith.constant 0 : index
    %c73_54 = arith.constant 73 : index
    %185 = vector.load %arg2[%184, %c0_53, %c73_54] : memref<2x5x324xf32, #tpu.memory_space<vmem>>, vector<1x4x16xf32>
    tpu.vector_store %arg2[%184, %c0_53, %c73_54], %183 {strides = array<i32>} : memref<2x5x324xf32, #tpu.memory_space<vmem>>, vector<1x4x16xf32>,
    %186 = arith.index_cast %c1_i32 : i32 to index
    %c0_55 = arith.constant 0 : index
    %c64_56 = arith.constant 64 : index
    %187 = vector.load %arg1[%186, %c0_55, %c64_56] : memref<2x4x256xf32, #tpu.memory_space<vmem>>, vector<1x4x16xf32>
    %188 = arith.index_cast %c1_i32 : i32 to index
    %c0_57 = arith.constant 0 : index
    %c91_58 = arith.constant 91 : index
    %189 = vector.load %arg2[%188, %c0_57, %c91_58] : memref<2x5x324xf32, #tpu.memory_space<vmem>>, vector<1x4x16xf32>
    tpu.vector_store %arg2[%188, %c0_57, %c91_58], %187 {strides = array<i32>} : memref<2x5x324xf32, #tpu.memory_space<vmem>>, vector<1x4x16xf32>,
    %190 = arith.index_cast %c1_i32 : i32 to index
    %c0_59 = arith.constant 0 : index
    %c80_60 = arith.constant 80 : index
    %191 = vector.load %arg1[%190, %c0_59, %c80_60] : memref<2x4x256xf32, #tpu.memory_space<vmem>>, vector<1x4x16xf32>
    %192 = arith.index_cast %c1_i32 : i32 to index
    %c0_61 = arith.constant 0 : index
    %c109_62 = arith.constant 109 : index
    %193 = vector.load %arg2[%192, %c0_61, %c109_62] : memref<2x5x324xf32, #tpu.memory_space<vmem>>, vector<1x4x16xf32>
    tpu.vector_store %arg2[%192, %c0_61, %c109_62], %191 {strides = array<i32>} : memref<2x5x324xf32, #tpu.memory_space<vmem>>, vector<1x4x16xf32>,
    %194 = arith.index_cast %c1_i32 : i32 to index
    %c0_63 = arith.constant 0 : index
    %c96_64 = arith.constant 96 : index
    %195 = vector.load %arg1[%194, %c0_63, %c96_64] : memref<2x4x256xf32, #tpu.memory_space<vmem>>, vector<1x4x16xf32>
    %196 = arith.index_cast %c1_i32 : i32 to index
    %c0_65 = arith.constant 0 : index
    %c127_66 = arith.constant 127 : index
    %197 = vector.load %arg2[%196, %c0_65, %c127_66] : memref<2x5x324xf32, #tpu.memory_space<vmem>>, vector<1x4x16xf32>
    tpu.vector_store %arg2[%196, %c0_65, %c127_66], %195 {strides = array<i32>} : memref<2x5x324xf32, #tpu.memory_space<vmem>>, vector<1x4x16xf32>,
    %198 = arith.index_cast %c1_i32 : i32 to index
    %c0_67 = arith.constant 0 : index
    %c112_68 = arith.constant 112 : index
    %199 = vector.load %arg1[%198, %c0_67, %c112_68] : memref<2x4x256xf32, #tpu.memory_space<vmem>>, vector<1x4x16xf32>
    %200 = arith.index_cast %c1_i32 : i32 to index
    %c0_69 = arith.constant 0 : index
    %c145_70 = arith.constant 145 : index
    %201 = vector.load %arg2[%200, %c0_69, %c145_70] : memref<2x5x324xf32, #tpu.memory_space<vmem>>, vector<1x4x16xf32>
    tpu.vector_store %arg2[%200, %c0_69, %c145_70], %199 {strides = array<i32>} : memref<2x5x324xf32, #tpu.memory_space<vmem>>, vector<1x4x16xf32>,
    %202 = arith.index_cast %c1_i32 : i32 to index
    %c0_71 = arith.constant 0 : index
    %c128_72 = arith.constant 128 : index
    %203 = vector.load %arg1[%202, %c0_71, %c128_72] : memref<2x4x256xf32, #tpu.memory_space<vmem>>, vector<1x4x16xf32>
    %204 = arith.index_cast %c1_i32 : i32 to index
    %c0_73 = arith.constant 0 : index
    %c163_74 = arith.constant 163 : index
    %205 = vector.load %arg2[%204, %c0_73, %c163_74] : memref<2x5x324xf32, #tpu.memory_space<vmem>>, vector<1x4x16xf32>
    tpu.vector_store %arg2[%204, %c0_73, %c163_74], %203 {strides = array<i32>} : memref<2x5x324xf32, #tpu.memory_space<vmem>>, vector<1x4x16xf32>,
    %206 = arith.index_cast %c1_i32 : i32 to index
    %c0_75 = arith.constant 0 : index
    %c144_76 = arith.constant 144 : index
    %207 = vector.load %arg1[%206, %c0_75, %c144_76] : memref<2x4x256xf32, #tpu.memory_space<vmem>>, vector<1x4x16xf32>
    %208 = arith.index_cast %c1_i32 : i32 to index
    %c0_77 = arith.constant 0 : index
    %c181_78 = arith.constant 181 : index
    %209 = vector.load %arg2[%208, %c0_77, %c181_78] : memref<2x5x324xf32, #tpu.memory_space<vmem>>, vector<1x4x16xf32>
    tpu.vector_store %arg2[%208, %c0_77, %c181_78], %207 {strides = array<i32>} : memref<2x5x324xf32, #tpu.memory_space<vmem>>, vector<1x4x16xf32>,
    %210 = arith.index_cast %c1_i32 : i32 to index
    %c0_79 = arith.constant 0 : index
    %c160_80 = arith.constant 160 : index
    %211 = vector.load %arg1[%210, %c0_79, %c160_80] : memref<2x4x256xf32, #tpu.memory_space<vmem>>, vector<1x4x16xf32>
    %212 = arith.index_cast %c1_i32 : i32 to index
    %c0_81 = arith.constant 0 : index
    %c199_82 = arith.constant 199 : index
    %213 = vector.load %arg2[%212, %c0_81, %c199_82] : memref<2x5x324xf32, #tpu.memory_space<vmem>>, vector<1x4x16xf32>
    tpu.vector_store %arg2[%212, %c0_81, %c199_82], %211 {strides = array<i32>} : memref<2x5x324xf32, #tpu.memory_space<vmem>>, vector<1x4x16xf32>,
    %214 = arith.index_cast %c1_i32 : i32 to index
    %c0_83 = arith.constant 0 : index
    %c176_84 = arith.constant 176 : index
    %215 = vector.load %arg1[%214, %c0_83, %c176_84] : memref<2x4x256xf32, #tpu.memory_space<vmem>>, vector<1x4x16xf32>
    %216 = arith.index_cast %c1_i32 : i32 to index
    %c0_85 = arith.constant 0 : index
    %c217_86 = arith.constant 217 : index
    %217 = vector.load %arg2[%216, %c0_85, %c217_86] : memref<2x5x324xf32, #tpu.memory_space<vmem>>, vector<1x4x16xf32>
    tpu.vector_store %arg2[%216, %c0_85, %c217_86], %215 {strides = array<i32>} : memref<2x5x324xf32, #tpu.memory_space<vmem>>, vector<1x4x16xf32>,
    %218 = arith.index_cast %c1_i32 : i32 to index
    %c0_87 = arith.constant 0 : index
    %c192_88 = arith.constant 192 : index
    %219 = vector.load %arg1[%218, %c0_87, %c192_88] : memref<2x4x256xf32, #tpu.memory_space<vmem>>, vector<1x4x16xf32>
    %220 = arith.index_cast %c1_i32 : i32 to index
    %c0_89 = arith.constant 0 : index
    %c235_90 = arith.constant 235 : index
    %221 = vector.load %arg2[%220, %c0_89, %c235_90] : memref<2x5x324xf32, #tpu.memory_space<vmem>>, vector<1x4x16xf32>
    tpu.vector_store %arg2[%220, %c0_89, %c235_90], %219 {strides = array<i32>} : memref<2x5x324xf32, #tpu.memory_space<vmem>>, vector<1x4x16xf32>,
    %222 = arith.index_cast %c1_i32 : i32 to index
    %c0_91 = arith.constant 0 : index
    %c208_92 = arith.constant 208 : index
    %223 = vector.load %arg1[%222, %c0_91, %c208_92] : memref<2x4x256xf32, #tpu.memory_space<vmem>>, vector<1x4x16xf32>
    %224 = arith.index_cast %c1_i32 : i32 to index
    %c0_93 = arith.constant 0 : index
    %c253_94 = arith.constant 253 : index
    %225 = vector.load %arg2[%224, %c0_93, %c253_94] : memref<2x5x324xf32, #tpu.memory_space<vmem>>, vector<1x4x16xf32>
    tpu.vector_store %arg2[%224, %c0_93, %c253_94], %223 {strides = array<i32>} : memref<2x5x324xf32, #tpu.memory_space<vmem>>, vector<1x4x16xf32>,
    %226 = arith.index_cast %c1_i32 : i32 to index
    %c0_95 = arith.constant 0 : index
    %c224_96 = arith.constant 224 : index
    %227 = vector.load %arg1[%226, %c0_95, %c224_96] : memref<2x4x256xf32, #tpu.memory_space<vmem>>, vector<1x4x16xf32>
    %228 = arith.index_cast %c1_i32 : i32 to index
    %c0_97 = arith.constant 0 : index
    %c271_98 = arith.constant 271 : index
    %229 = vector.load %arg2[%228, %c0_97, %c271_98] : memref<2x5x324xf32, #tpu.memory_space<vmem>>, vector<1x4x16xf32>
    tpu.vector_store %arg2[%228, %c0_97, %c271_98], %227 {strides = array<i32>} : memref<2x5x324xf32, #tpu.memory_space<vmem>>, vector<1x4x16xf32>,
    %230 = arith.index_cast %c1_i32 : i32 to index
    %c0_99 = arith.constant 0 : index
    %c240_100 = arith.constant 240 : index
    %231 = vector.load %arg1[%230, %c0_99, %c240_100] : memref<2x4x256xf32, #tpu.memory_space<vmem>>, vector<1x4x16xf32>
    %232 = arith.index_cast %c1_i32 : i32 to index
    %c0_101 = arith.constant 0 : index
    %c289_102 = arith.constant 289 : index
    %233 = vector.load %arg2[%232, %c0_101, %c289_102] : memref<2x5x324xf32, #tpu.memory_space<vmem>>, vector<1x4x16xf32>
    tpu.vector_store %arg2[%232, %c0_101, %c289_102], %231 {strides = array<i32>} : memref<2x5x324xf32, #tpu.memory_space<vmem>>, vector<1x4x16xf32>,
    %234 = arith.index_cast %c1_i32 : i32 to index
    %c4_103 = arith.constant 4 : index
    %c0_104 = arith.constant 0 : index
    %235 = vector.load %arg2[%234, %c4_103, %c0_104] : memref<2x5x324xf32, #tpu.memory_space<vmem>>, vector<1x1x324xf32>
    tpu.vector_store %arg2[%234, %c4_103, %c0_104], %98 {strides = array<i32>} : memref<2x5x324xf32, #tpu.memory_space<vmem>>, vector<1x1x324xf32>,
    %c2_i32 = arith.constant 2 : i32
    return
  }
  func.func @transform_0(%arg0: i32) -> (i32, i32, i32) {
    %c0_i32 = arith.constant 0 : i32
    %c0_i32_0 = arith.constant 0 : i32
    %c0_i32_1 = arith.constant 0 : i32
    return %arg0, %c0_i32, %c0_i32_0 : i32, i32, i32
  }
  func.func @transform_1(%arg0: i32) -> (i32, i32, i32) {
    %c0_i32 = arith.constant 0 : i32
    %c0_i32_0 = arith.constant 0 : i32
    %c0_i32_1 = arith.constant 0 : i32
    return %arg0, %c0_i32, %c0_i32_0 : i32, i32, i32
  }
}

</mosaic_0001>

<bundles_post_ra>
// kernel: tpu_custom_call.1
= control target key start
LH: loop header
LB: loop body
LE: loop exit
PB: predicated region body
PF: predicated region fallthrough
CT: control target
= control target key end

     0   :  { %6 = vsyncpa [#allocation3], 0  ;;  %s603_s9 = smov [#allocation2]   ;;  %s604_s11 = smov 128   ;;  %s857_s0 = inlined_call_operand.hbm [shape: f32[2,4,256], index: 0, kind: input, shape index: {}]   ;;  %s858_s1 = inlined_call_operand.vmem [shape: f32[2,5,324], index: 1, kind: output, shape index: {}]  }
   0x1   :  { %s11_s8 = sshll.u32 %s857_s0, 4  ;;  %s13_s10 = sshll.u32 %s603_s9, 4  ;;  %s12_s8 = int_to_ptr.hbm [resolvable:$true] %s11_s8  ;;  %s14_s10 = int_to_ptr.vmem [resolvable:$true] %s13_s10 }
   0x2   :  { %s605_s12 = smov 8  }
   0x3   :  { %19 = dma.hbm_to_vmem [thread:$0]  %s12_s8, 256, %s14_s10, [#allocation3], %s604_s11, %s604_s11, %s605_s12  }
   0x4   :  { %601 = dma.done.wait [#allocation3], 256  }
   0x5   :  { %602 = vsyncadd [#allocation3], 4294967040  ;;  %v24_v0 = vlaneseq  ;;  %v224_v2 = vld [vmem:[#allocation2] sm:$0xf]  ;;  %s606_s0 = smov 19   ;;  %v865_v8 = vmov 0 }
   0x6   :  { %226 = vst [vmem:[#allocation1] ss:$2 sm:$0xff] %v224_v2  ;;  %v233_v5 = vld [vmem:[#allocation2] sm:$0xf]  ;;  %s607_s13 = smov 21   ;;  %v608_v13 = vmov 1.0  }
   0x7   :  { %v25_v1 = vand.u32 127, %v24_v0  ;;  %v242_v9 = vld [vmem:[#allocation2] sm:$0xf]  ;;  %s609_s14 = smov 23   ;;  %s610_s19 = smov 25  }
   0x8   :  { %v251_v12 = vld [vmem:[#allocation2] sm:$0xf]  ;;  %s611_s20 = smov 27   ;;  %s612_s21 = smov 29   ;;  %v298_v30 = vld [vmem:[#allocation2 + $0x4] sm:$0xf] }
   0x9   :  { %vm28_vm0 = vcmp.ge.s32.totalorder %v25_v1, 19  ;;  %vm31_vm1 = vcmp.lt.s32.totalorder %v25_v1, 35  ;;  %vm37_vm3 = vcmp.ge.s32.totalorder %v25_v1, 37  ;;  %vm40_vm4 = vcmp.lt.s32.totalorder %v25_v1, 53  ;;  %v260_v22 = vld [vmem:[#allocation2] sm:$0xf] }
   0xa   :  { %vm34_vm2 = vmand %vm28_vm0, %vm31_vm1  ;;  %vm49_vm5 = vcmp.ge.s32.totalorder %v25_v1, 55  ;;  %vm52_vm6 = vcmp.lt.s32.totalorder %v25_v1, 71  ;;  %vm61_vm9 = vcmp.ge.s32.totalorder %v25_v1, 73  ;;  %vm64_vm10 = vcmp.lt.s32.totalorder %v25_v1, 89  ;;  %v269_v24 = vld [vmem:[#allocation2] sm:$0xf] }
   0xb   :  { %vm43_vm7 = vmand %vm37_vm3, %vm40_vm4  ;;  %vm73_vm13 = vcmp.ge.s32.totalorder %v25_v1, 91  ;;  %vm76_vm14 = vcmp.lt.s32.totalorder %v25_v1, 107  ;;  %v26_v3 = vadd.s32 128, %v25_v1  ;;  %vm85_vm1 = vcmp.ge.s32.totalorder %v25_v1, 109  ;;  %v278_v26 = vld [vmem:[#allocation2] sm:$0xf] }
   0xc   :  { %vm46_vm8 = vmor %vm34_vm2, %vm43_vm7  ;;  %vm88_vm3 = vcmp.lt.s32.totalorder %v25_v1, 125  ;;  %v27_v10 = vadd.s32 256, %v25_v1  ;;  %v289_v28 = vld [vmem:[#allocation2] sm:$0xf]  ;;  %s613_s22 = smov 31   ;;  %s614_s23 = smov 33  }
   0xd   :  { %vm55_vm11 = vmand %vm49_vm5, %vm52_vm6  ;;  %vm110_vm5 = vcmp.ge.s32.totalorder %v26_v3, 145  ;;  %vm113_vm6 = vcmp.lt.s32.totalorder %v26_v3, 161  ;;  %v227_v7 = vld.sshfl [vmem:[#allocation1] sm:$0xff pattern:$0x75316420]  ;;  %s615_s24 = smov 35  }
   0xe   :  { %vm58_vm12 = vmor %vm46_vm8, %vm55_vm11  ;;  %vm101_vm8 = vcmp.lt.s32.totalorder %v26_v3, 143  ;;  %vm125_vm11 = vcmp.lt.s32.totalorder %v26_v3, 179  ;;  %235 = vst [vmem:[#allocation1] ss:$2 sm:$0xff] %v233_v5  ;;  %228 = vrot.lane.b32.xlu0 %v227_v7, %s606_s0  ;;  %v307_v32 = vld [vmem:[#allocation2 + $0x4] sm:$0xf] }
   0xf   :  { %vm67_vm15 = vmand %vm61_vm9, %vm64_vm10  ;;  %vm122_vm10 = vcmp.ge.s32.totalorder %v26_v3, 163  ;;  %v316_v34 = vld [vmem:[#allocation2 + $0x4] sm:$0xf]  ;;  %s616_s25 = smov 37   ;;  %s617_s26 = smov 39  }
  0x10   :  { %vm70_vm0 = vmor %vm58_vm12, %vm67_vm15  ;;  %vm97_vm12 = vcmp.ge.s32.totalorder %v25_v1, 127  ;;  %vm134_vm15 = vcmp.ge.s32.totalorder %v26_v3, 181  ;;  %v325_v36 = vld [vmem:[#allocation2 + $0x4] sm:$0xf]  ;;  %s618_s27 = smov 41   ;;  %s619_s28 = smov 43  }
  0x11   :  { %vm79_vm4 = vmand %vm73_vm13, %vm76_vm14  ;;  %v334_v38 = vld [vmem:[#allocation2 + $0x4] sm:$0xf]  ;;  %s620_s29 = smov 45   ;;  %s621_s30 = smov 47   ;;  %v394_v46 = vld [vmem:[#allocation2 + $0x8] sm:$0xf] }
  0x12   :  { %vm638_vm2 = vmor %vm70_vm0, %vm79_vm4  ;;  %vm137_vm0 = vcmp.lt.s32.totalorder %v26_v3, 197  ;;  %v343_v40 = vld [vmem:[#allocation2 + $0x4] sm:$0xf]  ;;  %s622_s2 = smov 49   ;;  %v402_v48 = vld [vmem:[#allocation2 + $0x8] sm:$0xf] }
  0x13   :  { %vm642_vm7 = vmand %vm85_vm1, %vm88_vm3  ;;  %v354_v42 = vld [vmem:[#allocation2 + $0x4] sm:$0xf]  ;;  %v410_v50 = vld [vmem:[#allocation2 + $0x8] sm:$0xf] }
  0x14   :  { %vm94_vm9 = vmor %vm638_vm2, %vm642_vm7  ;;  %vm146_vm2 = vcmp.ge.s32.totalorder %v26_v3, 199  ;;  %vm149_vm7 = vcmp.lt.s32.totalorder %v26_v3, 215  ;;  %v363_v44 = vld [vmem:[#allocation2 + $0x4] sm:$0xf]  ;;  %v418_v52 = vld [vmem:[#allocation2 + $0x8] sm:$0xf] }
  0x15   :  { %vm116_vm13 = vmand %vm110_vm5, %vm113_vm6  ;;  %v236_v11 = vld.sshfl [vmem:[#allocation1] sm:$0xff pattern:$0x75316420]  ;;  %v426_v54 = vld [vmem:[#allocation2 + $0x8] sm:$0xf] }
  0x16   :  { %vm119_vm14 = vmor %vm101_vm8, %vm116_vm13  ;;  %vm158_vm8 = vcmp.ge.s32.totalorder %v26_v3, 217  ;;  %vm161_vm13 = vcmp.lt.s32.totalorder %v26_v3, 233  ;;  %244 = vst [vmem:[#allocation1] ss:$2 sm:$0xff] %v242_v9  ;;  %237 = vrot.lane.b32.xlu0 %v236_v11, %s607_s13  ;;  %v434_v56 = vld [vmem:[#allocation2 + $0x8] sm:$0xf] }
  0x17   :  { %vm128_vm1 = vmand %vm122_vm10, %vm125_vm11  ;;  %v442_v58 = vld [vmem:[#allocation2 + $0x8] sm:$0xf]  ;;  %v459_v62 = vld [vmem:[#allocation2 + $0xc] sm:$0xf] }
  0x18   :  { %vm651_vm3 = vmor %vm94_vm9, %vm97_vm12  ;;  %vm170_vm9 = vcmp.ge.s32.totalorder %v26_v3, 235  ;;  %vm173_vm12 = vcmp.lt.s32.totalorder %v26_v3, 251  ;;  %v451_v60 = vld [vmem:[#allocation2 + $0x8] sm:$0xf]  ;;  %v475_v2 = vld [vmem:[#allocation2 + $0xc] sm:$0xf] }
  0x19   :  { %v866_v8 = vsel %vm651_vm3, 4294967295, %v865_v8  ;;  %vm131_vm4 = vmor %vm119_vm14, %vm128_vm1  ;;  %vm182_vm14 = vcmp.ge.s32.totalorder %v26_v3, 253  ;;  %v483_v4 = vld [vmem:[#allocation2 + $0xc] sm:$0xf] }
  0x1a   :  { %vm140_vm5 = vmand %vm134_vm15, %vm137_vm0  ;;  %vm195_vm15 = vcmp.ge.s32.totalorder %v27_v10, 271  ;;  %v491_v6 = vld [vmem:[#allocation2 + $0xc] sm:$0xf] }
  0x1b   :  { %vm143_vm6 = vmor %vm131_vm4, %vm140_vm5  ;;  %vm198_vm4 = vcmp.lt.s32.totalorder %v27_v10, 287 }
  0x1c   :  { %vm152_vm10 = vmand %vm146_vm2, %vm149_vm7  ;;  %vm186_vm2 = vcmp.lt.s32.totalorder %v27_v10, 269 }
  0x1d   :  { %vm155_vm11 = vmor %vm143_vm6, %vm152_vm10  ;;  %vm207_vm6 = vcmp.ge.s32.totalorder %v27_v10, 289  ;;  %vm210_vm10 = vcmp.lt.s32.totalorder %v27_v10, 305  ;;  %v245_v17 = vld.sshfl [vmem:[#allocation1] sm:$0xff pattern:$0x75316420]  ;;  %v623_v10 = vmov 0.0  }
  0x1e   :  { %vm164_vm3 = vmand %vm158_vm8, %vm161_vm13  ;;  %246 = vrot.lane.b32.xlu1 %v245_v17, %s609_s14  ;;  %253 = vst [vmem:[#allocation1] ss:$2 sm:$0xff] %v251_v12  ;;  %v499_v12 = vld [vmem:[#allocation2 + $0xc] sm:$0xf] }
  0x1f   :  { %vm167_vm1 = vmor %vm155_vm11, %vm164_vm3  ;;  %vm867_vm3 = vnez %v866_v8  ;;  %vm377_vm11 = vcmask 1040384   ;;  %220 = vst [vmem:[%s858_s1] sm:$0xf] %v623_v10  ;;  %v508_v17 = vld [vmem:[#allocation2 + $0xc] sm:$0xf] }
  0x20   :  { %vm176_vm0 = vmand %vm170_vm9, %vm173_vm12  ;;  %v217_v15 = vsel %vm867_vm3, 0.0, %v608_v13  ;;  %221 = vst [vmem:[%s858_s1 + $0x8] sm:$0xf] %v623_v10  ;;  %vm305_vm3 = vcmask 412952  }
  0x21   :  { %vm179_vm5 = vmor %vm167_vm1, %vm176_vm0  ;;  %vm379_vm1 = vcmask 1041408   ;;  %vm231_vm0 = vcmask 281752   ;;  %534 = vst [vmem:[%s858_s1 + $0x18] sm:$0xf] %v623_v10 }
  0x22   :  { %vm191_vm7 = vmor %vm179_vm5, %vm182_vm14  ;;  %vm384_vm14 = vcmp.lt.s32.totalorder %v24_v0, 324  ;;  %v467_v0 = vld [vmem:[#allocation2 + $0xc] sm:$0xf]  ;;  %535 = vst [vmem:[%s858_s1 + $0x20] sm:$0xf] %v623_v10  ;;  %vm249_vm5 = vcmask 576952  }
  0x23   :  { %vm201_vm8 = vmand %vm195_vm15, %vm198_vm4  ;;  %v218_v14 = vsel %vm191_vm7, 0.0, %v608_v13  ;;  %vm222_vm15 = vcmask 551936   ;;  %vm240_vm4 = vcmask 429352   ;;  %vm267_vm7 = vcmask 872152  }
  0x24   :  { %vm204_vm13 = vmor %vm186_vm2, %vm201_vm8  ;;  %v375_v16 = vrot.slane %v218_v14, 7  ;;  %223 = vst.msk [vmem:[%s858_s1 + $0x10] sm:$0xf] %vm222_vm15, %v623_v10  ;;  %vm258_vm2 = vcmask 724552   ;;  %vm287_vm8 = vcmask 117760  }
  0x25   :  { %vm213_vm9 = vmand %vm207_vm6, %vm210_vm10  ;;  %v254_v23 = vld.sshfl [vmem:[#allocation1] sm:$0xff pattern:$0x75316420]  ;;  %536 = vst.msk [vmem:[%s858_s1 + $0x28] sm:$0xf] %vm222_vm15, %v623_v10  ;;  %vm276_vm6 = vcmask 1019752  }
  0x26   :  { %vm216_vm12 = vmor %vm204_vm13, %vm213_vm9  ;;  %v378_v19 = vsel %vm377_vm11, %v217_v15, %v375_v16  ;;  %255 = vrot.lane.b32.xlu1 %v254_v23, %s610_s19  ;;  %262 = vst [vmem:[#allocation1] ss:$2 sm:$0xff] %v260_v22  ;;  %vm285_vm10 = vcmask 1044472   ;;  %vm296_vm13 = vcmask 265352   ;;  %v516_v22 = vld [vmem:[#allocation2 + $0xc] sm:$0xf] }
  0x27   :  { %v219_v18 = vsel %vm216_vm12, 0.0, %v608_v13  ;;  %vm859_vm11 = vcmask 560552   ;;  %vm323_vm9 = vcmask 708152   ;;  %vm860_vm12 = vcmask 855752  }
  0x28   :  { %v376_v20 = vrot.slane %v219_v18, 6  ;;  %vm350_vm15 = vcmask 1044456  }
  0x2a   :  { %v380_v21 = vsel %vm379_vm1, %v378_v19, %v376_v20  ;;  %vm352_vm1 = vcmask 101376  }
  0x2b   :  { %533 = vst.msk [vmem:[%s858_s1 + $0x4] ss:$8 sm:$0x7] %vm384_vm14, %v380_v21 }
  0x2c   :  { %555 = vst.msk [vmem:[%s858_s1 + $0x1c] ss:$8 sm:$0x7] %vm384_vm14, %v380_v21  ;;  %vm341_vm14 = vcmask 1003352  }
  0x2d   :  { %v263_v25 = vld.sshfl [vmem:[#allocation1] sm:$0xff pattern:$0x75316420] }
  0x2e   :  { %271 = vst [vmem:[#allocation1] ss:$2 sm:$0xff] %v269_v24  ;;  %264 = vrot.lane.b32.xlu2 %v263_v25, %s611_s20 }
  0x35   :  { %v272_v27 = vld.sshfl [vmem:[#allocation1] sm:$0xff pattern:$0x75316420] }
  0x36   :  { %280 = vst [vmem:[#allocation1] ss:$2 sm:$0xff] %v278_v26  ;;  %273 = vrot.lane.b32.xlu2 %v272_v27, %s612_s21 }
  0x3d   :  { %v281_v29 = vld.sshfl [vmem:[#allocation1] sm:$0xff pattern:$0x75316420] }
  0x3e   :  { %291 = vst [vmem:[#allocation1] ss:$2 sm:$0xff] %v289_v28  ;;  %282 = vrot.lane.b32.xlu0 %v281_v29, %s613_s22 }
  0x45   :  { %v292_v31 = vld.sshfl [vmem:[#allocation1] sm:$0xff pattern:$0x75316420] }
  0x46   :  { %293 = vrot.lane.b32.xlu1 %v292_v31, %s614_s23  ;;  %300 = vst [vmem:[#allocation1] ss:$2 sm:$0xff] %v298_v30 }
  0x4d   :  { %v301_v33 = vld.sshfl [vmem:[#allocation1] sm:$0xff pattern:$0x75316420] }
  0x4e   :  { %309 = vst [vmem:[#allocation1] ss:$2 sm:$0xff] %v307_v32  ;;  %302 = vrot.lane.b32.xlu2 %v301_v33, %s615_s24 }
  0x55   :  { %v310_v35 = vld.sshfl [vmem:[#allocation1] sm:$0xff pattern:$0x75316420] }
  0x56   :  { %318 = vst [vmem:[#allocation1] ss:$2 sm:$0xff] %v316_v34  ;;  %311 = vrot.lane.b32.xlu0 %v310_v35, %s616_s25 }
  0x5d   :  { %v319_v37 = vld.sshfl [vmem:[#allocation1] sm:$0xff pattern:$0x75316420] }
  0x5e   :  { %320 = vrot.lane.b32.xlu1 %v319_v37, %s617_s26  ;;  %327 = vst [vmem:[#allocation1] ss:$2 sm:$0xff] %v325_v36 }
  0x65   :  { %v328_v39 = vld.sshfl [vmem:[#allocation1] sm:$0xff pattern:$0x75316420] }
  0x66   :  { %336 = vst [vmem:[#allocation1] ss:$2 sm:$0xff] %v334_v38  ;;  %329 = vrot.lane.b32.xlu2 %v328_v39, %s618_s27 }
  0x6d   :  { %v337_v41 = vld.sshfl [vmem:[#allocation1] sm:$0xff pattern:$0x75316420] }
  0x6e   :  { %345 = vst [vmem:[#allocation1] ss:$2 sm:$0xff] %v343_v40  ;;  %338 = vrot.lane.b32.xlu0 %v337_v41, %s619_s28 }
  0x75   :  { %v346_v43 = vld.sshfl [vmem:[#allocation1] sm:$0xff pattern:$0x75316420] }
  0x76   :  { %347 = vrot.lane.b32.xlu1 %v346_v43, %s620_s29  ;;  %356 = vst [vmem:[#allocation1] ss:$2 sm:$0xff] %v354_v42 }
  0x7d   :  { %v357_v45 = vld.sshfl [vmem:[#allocation1] sm:$0xff pattern:$0x75316420] }
  0x7e   :  { %365 = vst [vmem:[#allocation1] ss:$2 sm:$0xff] %v363_v44  ;;  %358 = vrot.lane.b32.xlu2 %v357_v45, %s621_s30 }
  0x80   :  { %v229_v9 = vpop.permute.xlu0 %228 }
  0x81   :  { %232 = vst.msk [vmem:[%s858_s1] sm:$0xf] %vm231_vm0, %v229_v9 }
  0x85   :  { %v366_v47 = vld.sshfl [vmem:[#allocation1] sm:$0xff pattern:$0x75316420] }
  0x86   :  { %396 = vst [vmem:[#allocation1] ss:$2 sm:$0xff] %v394_v46  ;;  %367 = vrot.lane.b32.xlu0 %v366_v47, %s622_s2 }
  0x88   :  { %v265_v11 = vpop.permute.xlu2 %264  ;;  %v238_v15 = vpop.permute.xlu0 %237 }
  0x89   :  { %241 = vst.msk [vmem:[%s858_s1] sm:$0xf] %vm240_vm4, %v238_v15 }
  0x8d   :  { %v397_v49 = vld.sshfl [vmem:[#allocation1] sm:$0xff pattern:$0x75316420] }
  0x8e   :  { %398 = vrot.lane.b32.xlu1 %v397_v49, %s606_s0  ;;  %404 = vst [vmem:[#allocation1] ss:$2 sm:$0xff] %v402_v48 }
  0x90   :  { %v247_v8 = vpop.permute.xlu1 %246  ;;  %v274_v16 = vpop.permute.xlu2 %273 }
  0x91   :  { %250 = vst.msk [vmem:[%s858_s1] sm:$0xf] %vm249_vm5, %v247_v8 }
  0x95   :  { %v405_v51 = vld.sshfl [vmem:[#allocation1] sm:$0xff pattern:$0x75316420] }
  0x96   :  { %406 = vrot.lane.b32.xlu1 %v405_v51, %s607_s13  ;;  %412 = vst [vmem:[#allocation1] ss:$2 sm:$0xff] %v410_v50 }
  0x98   :  { %v256_v14 = vpop.permute.xlu1 %255 }
  0x99   :  { %259 = vst.msk [vmem:[%s858_s1] sm:$0xf] %vm258_vm2, %v256_v14 }
  0x9a   :  { %268 = vst.msk [vmem:[%s858_s1] sm:$0xf] %vm267_vm7, %v265_v11 }
  0x9b   :  { %277 = vst.msk [vmem:[%s858_s1] sm:$0xf] %vm276_vm6, %v274_v16 }
  0x9d   :  { %v413_v53 = vld.sshfl [vmem:[#allocation1] sm:$0xff pattern:$0x75316420] }
  0x9e   :  { %414 = vrot.lane.b32.xlu0 %v413_v53, %s609_s14  ;;  %420 = vst [vmem:[#allocation1] ss:$2 sm:$0xff] %v418_v52 }
  0xa5   :  { %v421_v55 = vld.sshfl [vmem:[#allocation1] sm:$0xff pattern:$0x75316420] }
  0xa6   :  { %428 = vst [vmem:[#allocation1] ss:$2 sm:$0xff] %v426_v54  ;;  %422 = vrot.lane.b32.xlu2 %v421_v55, %s610_s19 }
  0xa8   :  { %v303_v21 = vpop.permute.xlu2 %302 }
  0xad   :  { %v429_v57 = vld.sshfl [vmem:[#allocation1] sm:$0xff pattern:$0x75316420] }
  0xae   :  { %430 = vrot.lane.b32.xlu1 %v429_v57, %s611_s20  ;;  %436 = vst [vmem:[#allocation1] ss:$2 sm:$0xff] %v434_v56 }
  0xb0   :  { %v283_v20 = vpop.permute.xlu0 %282 }
  0xb1   :  { %286 = vst.msk [vmem:[%s858_s1] sm:$0xf] %vm285_vm10, %v283_v20 }
  0xb2   :  { %288 = vst.msk [vmem:[%s858_s1 + $0x8] sm:$0xf] %vm287_vm8, %v283_v20 }
  0xb5   :  { %v437_v59 = vld.sshfl [vmem:[#allocation1] sm:$0xff pattern:$0x75316420] }
  0xb6   :  { %438 = vrot.lane.b32.xlu1 %v437_v59, %s612_s21  ;;  %444 = vst [vmem:[#allocation1] ss:$2 sm:$0xff] %v442_v58 }
  0xb8   :  { %v294_v19 = vpop.permute.xlu1 %293 }
  0xb9   :  { %297 = vst.msk [vmem:[%s858_s1 + $0x8] sm:$0xf] %vm296_vm13, %v294_v19 }
  0xba   :  { %306 = vst.msk [vmem:[%s858_s1 + $0x8] sm:$0xf] %vm305_vm3, %v303_v21 }
  0xbd   :  { %v445_v61 = vld.sshfl [vmem:[#allocation1] sm:$0xff pattern:$0x75316420] }
  0xbe   :  { %453 = vst [vmem:[#allocation1] ss:$2 sm:$0xff] %v451_v60  ;;  %446 = vrot.lane.b32.xlu2 %v445_v61, %s613_s22 }
  0xc0   :  { %v330_v26 = vpop.permute.xlu2 %329 }
  0xc5   :  { %v454_v63 = vld.sshfl [vmem:[#allocation1] sm:$0xff pattern:$0x75316420] }
  0xc6   :  { %455 = vrot.lane.b32.xlu0 %v454_v63, %s614_s23  ;;  %461 = vst [vmem:[#allocation1] ss:$2 sm:$0xff] %v459_v62 }
  0xc8   :  { %v312_v25 = vpop.permute.xlu0 %311 }
  0xc9   :  { %315 = vst.msk [vmem:[%s858_s1 + $0x8] sm:$0xf] %vm859_vm11, %v312_v25  ;;  %vm361_vm11 = vcmask 248952  }
  0xcd   :  { %v462_v1 = vld.sshfl [vmem:[#allocation1] sm:$0xff pattern:$0x75316420] }
  0xce   :  { %469 = vst [vmem:[#allocation1] ss:$2 sm:$0xff] %v467_v0  ;;  %463 = vrot.lane.b32.xlu2 %v462_v1, %s615_s24 }
  0xd0   :  { %v321_v24 = vpop.permute.xlu1 %320 }
  0xd1   :  { %324 = vst.msk [vmem:[%s858_s1 + $0x8] sm:$0xf] %vm323_vm9, %v321_v24 }
  0xd2   :  { %333 = vst.msk [vmem:[%s858_s1 + $0x8] sm:$0xf] %vm860_vm12, %v330_v26  ;;  %vm370_vm12 = vcmask 396552  }
  0xd5   :  { %v470_v3 = vld.sshfl [vmem:[#allocation1] sm:$0xff pattern:$0x75316420] }
  0xd6   :  { %471 = vrot.lane.b32.xlu1 %v470_v3, %s616_s25  ;;  %477 = vst [vmem:[#allocation1] ss:$2 sm:$0xff] %v475_v2 }
  0xd8   :  { %v359_v30 = vpop.permute.xlu2 %358 }
  0xdd   :  { %v478_v5 = vld.sshfl [vmem:[#allocation1] sm:$0xff pattern:$0x75316420] }
  0xde   :  { %479 = vrot.lane.b32.xlu0 %v478_v5, %s617_s26  ;;  %485 = vst [vmem:[#allocation1] ss:$2 sm:$0xff] %v483_v4 }
  0xe0   :  { %v339_v29 = vpop.permute.xlu0 %338 }
  0xe1   :  { %342 = vst.msk [vmem:[%s858_s1 + $0x8] sm:$0xf] %vm341_vm14, %v339_v29 }
  0xe5   :  { %v486_v7 = vld.sshfl [vmem:[#allocation1] sm:$0xff pattern:$0x75316420] }
  0xe6   :  { %493 = vst [vmem:[#allocation1] ss:$2 sm:$0xff] %v491_v6  ;;  %487 = vrot.lane.b32.xlu2 %v486_v7, %s618_s27 }
  0xe8   :  { %v348_v28 = vpop.permute.xlu1 %347 }
  0xe9   :  { %353 = vst.msk [vmem:[%s858_s1 + $0x10] sm:$0xf] %vm352_vm1, %v348_v28 }
  0xea   :  { %351 = vst.msk [vmem:[%s858_s1 + $0x8] sm:$0xf] %vm350_vm15, %v348_v28 }
  0xeb   :  { %362 = vst.msk [vmem:[%s858_s1 + $0x10] sm:$0xf] %vm361_vm11, %v359_v30 }
  0xed   :  { %v494_v13 = vld.sshfl [vmem:[#allocation1] sm:$0xff pattern:$0x75316420] }
  0xee   :  { %501 = vst [vmem:[#allocation1] ss:$2 sm:$0xff] %v499_v12  ;;  %495 = vrot.lane.b32.xlu2 %v494_v13, %s619_s28 }
  0xf5   :  { %v502_v18 = vld.sshfl [vmem:[#allocation1] sm:$0xff pattern:$0x75316420] }
  0xf6   :  { %503 = vrot.lane.b32.xlu0 %v502_v18, %s620_s29  ;;  %510 = vst [vmem:[#allocation1] ss:$2 sm:$0xff] %v508_v17 }
  0xf8   :  { %v368_v32 = vpop.permute.xlu0 %367 }
  0xf9   :  { %371 = vst.msk [vmem:[%s858_s1 + $0x10] sm:$0xf] %vm370_vm12, %v368_v32 }
  0xfd   :  { %v511_v23 = vld.sshfl [vmem:[#allocation1] sm:$0xff pattern:$0x75316420] }
  0xfe   :  { %512 = vrot.lane.b32.xlu0 %v511_v23, %s621_s30  ;;  %518 = vst [vmem:[#allocation1] ss:$2 sm:$0xff] %v516_v22 }
 0x100   :  { %v399_v31 = vpop.permute.xlu1 %398  ;;  %v423_v33 = vpop.permute.xlu2 %422 }
 0x101   :  { %537 = vst.msk [vmem:[%s858_s1 + $0x18] sm:$0xf] %vm231_vm0, %v399_v31  ;;  %vm868_vm0 = vcmask 560552  }
 0x105   :  { %v519_v27 = vld.sshfl [vmem:[#allocation1] sm:$0xff pattern:$0x75316420] }
 0x106   :  { %520 = vrot.lane.b32.xlu1 %v519_v27, %s622_s2 }
 0x108   :  { %v407_v34 = vpop.permute.xlu1 %406 }
 0x109   :  { %538 = vst.msk [vmem:[%s858_s1 + $0x18] sm:$0xf] %vm240_vm4, %v407_v34  ;;  %vm869_vm4 = vcmask 855752  }
 0x110   :  { %v415_v35 = vpop.permute.xlu0 %414 }
 0x111   :  { %539 = vst.msk [vmem:[%s858_s1 + $0x18] sm:$0xf] %vm249_vm5, %v415_v35 }
 0x112   :  { %540 = vst.msk [vmem:[%s858_s1 + $0x18] sm:$0xf] %vm258_vm2, %v423_v33 }
 0x118   :  { %v447_v36 = vpop.permute.xlu2 %446 }
 0x119   :  { %544 = vst.msk [vmem:[%s858_s1 + $0x20] sm:$0xf] %vm287_vm8, %v447_v36 }
 0x120   :  { %v431_v37 = vpop.permute.xlu1 %430 }
 0x121   :  { %541 = vst.msk [vmem:[%s858_s1 + $0x18] sm:$0xf] %vm267_vm7, %v431_v37 }
 0x128   :  { %v439_v38 = vpop.permute.xlu1 %438  ;;  %v464_v40 = vpop.permute.xlu2 %463 }
 0x129   :  { %542 = vst.msk [vmem:[%s858_s1 + $0x18] sm:$0xf] %vm276_vm6, %v439_v38 }
 0x12a   :  { %543 = vst.msk [vmem:[%s858_s1 + $0x18] sm:$0xf] %vm285_vm10, %v447_v36 }
 0x138   :  { %v456_v39 = vpop.permute.xlu0 %455 }
 0x139   :  { %545 = vst.msk [vmem:[%s858_s1 + $0x20] sm:$0xf] %vm296_vm13, %v456_v39 }
 0x13a   :  { %546 = vst.msk [vmem:[%s858_s1 + $0x20] sm:$0xf] %vm305_vm3, %v464_v40 }
 0x140   :  { %v488_v41 = vpop.permute.xlu2 %487 }
 0x148   :  { %v472_v42 = vpop.permute.xlu1 %471  ;;  %v496_v44 = vpop.permute.xlu2 %495 }
 0x149   :  { %547 = vst.msk [vmem:[%s858_s1 + $0x20] sm:$0xf] %vm868_vm0, %v472_v42 }
 0x150   :  { %v480_v43 = vpop.permute.xlu0 %479 }
 0x151   :  { %548 = vst.msk [vmem:[%s858_s1 + $0x20] sm:$0xf] %vm323_vm9, %v480_v43 }
 0x152   :  { %549 = vst.msk [vmem:[%s858_s1 + $0x20] sm:$0xf] %vm869_vm4, %v488_v41 }
 0x153   :  { %550 = vst.msk [vmem:[%s858_s1 + $0x20] sm:$0xf] %vm341_vm14, %v496_v44 }
 0x168   :  { %v504_v45 = vpop.permute.xlu0 %503 }
 0x169   :  { %551 = vst.msk [vmem:[%s858_s1 + $0x20] sm:$0xf] %vm350_vm15, %v504_v45 }
 0x16a   :  { %552 = vst.msk [vmem:[%s858_s1 + $0x28] sm:$0xf] %vm352_vm1, %v504_v45 }
 0x170   :  { %v513_v46 = vpop.permute.xlu0 %512 }
 0x171   :  { %553 = vst.msk [vmem:[%s858_s1 + $0x28] sm:$0xf] %vm361_vm11, %v513_v46 }
 0x178   :  { %v521_v47 = vpop.permute.xlu1 %520 }
 0x179   :  { %554 = vst.msk [vmem:[%s858_s1 + $0x28] sm:$0xf] %vm370_vm12, %v521_v47 }
 0x17a   :  { %531 = vsyncpa [#allocation3], 1 }

</bundles_post_ra>
